<compile_context>
chip_gen: v7x
topology: tpu7x:2x2x1
jax: 0.10.0
libtpu: 0.0.40
codegen_flags: <defaults>
</compile_context>

<pallas_src>
import math

import jax
import jax.numpy as jnp
from jax.experimental import pallas as pl
from jax.experimental.pallas import tpu as pltpu


def _afgc_kernel(w_ref, x_ref, o_ref):
    # w_ref: (k,) float32 in SMEM       (conv1d weight, squeezed from (1,1,k))
    # x_ref: (Bt, C, HW) in VMEM        (Bt batch elements, lane-dense spatial)
    # o_ref: (Bt, C, HW) in VMEM
    Bt, C, HW = x_ref.shape
    k = w_ref.shape[0]
    pad = (k - 1) // 2

    # Global average pool over the spatial (lane) axis, accumulated in f32.
    # First read of x_ref; the tile value is deliberately NOT kept live across
    # the gate path (only 64 vregs — a multi-MiB block would spill).
    y = jnp.sum(x_ref[...], axis=-1, keepdims=True, dtype=jnp.float32) * (1.0 / HW)

    # --- tiny gate path: zero-padded 1-D cross-correlation along channels ---
    # Flatten batches onto the sublane axis; masked rolls never mix batches
    # because a valid (in-range) tap always stays inside the same C-block.
    # This lives on XLU/EUP slots, which have full slack in an HBM-bound kernel.
    R = Bt * C
    yf = y.reshape(R, 1)
    row = jax.lax.broadcasted_iota(jnp.int32, (R, 1), 0)
    ch = row % C                                        # channel index within each batch
    acc = jnp.zeros((R, 1), jnp.float32)
    for j in range(k):                                  # k is tiny and static
        shift = (pad - j) % R                           # rolled[r] = yf[(r + j - pad) mod R]
        rolled = pltpu.roll(yf, shift=shift, axis=0)
        src = ch + (j - pad)
        mask = (src >= 0) & (src < C)                   # zero-padding outside [0, C)
        acc = acc + w_ref[j] * jnp.where(mask, rolled, 0.0)

    gate = jax.nn.sigmoid(acc).reshape(Bt, C, 1).astype(o_ref.dtype)

    # Second read of x_ref for the broadcast multiply; lane-dense store.
    o_ref[...] = x_ref[...] * gate


def _vmem_capacity_bytes():
    """Physical VMEM per TensorCore (generation-aware, with a safe fallback)."""
    try:
        info = pltpu.get_tpu_info()
        cap = int(getattr(info, "vmem_capacity_bytes", 0))
        if cap > 0:
            return cap
    except Exception:
        pass
    return 64 * 1024 * 1024            # conservative: v7x per-TC VMEM


def _pick_batch_tile(B, bytes_per_batch, budget_bytes, buffering):
    """Batch tile giving ~1-4 MiB blocks and >= 4 (even) grid steps if possible."""
    target_hi = 4 * 1024 * 1024        # ~512-wide tiles already hit ~85% of HBM roofline
    divisors = [d for d in range(1, B + 1) if B % d == 0]
    fits = [d for d in divisors if buffering * d * bytes_per_batch <= budget_bytes]
    if not fits:
        # A single batch element alone exceeds the budget.
        # TODO(synk): tile the channel axis with a (k-1)//2-row halo slab
        # (grid=(B, C//ct)) instead of a monolithic (1, C, HW) block, keeping
        # HBM traffic at the 2x (read+write) optimum.
        return 1

    def score(d):
        steps = B // d
        block = d * bytes_per_batch
        return (
            steps >= 4 and steps % 2 == 0,  # even, >=4 steps: both v7x TCs busy, DMA overlap
            steps >= 4,
            steps >= 2,
            block <= target_hi,             # small blocks already saturate HBM
            block if block <= target_hi else -block,  # then fewest steps / least overhead
        )

    return max(fits, key=score)


def afgc_attention(x, w, *, vmem_budget_bytes=None, donate_x=False):
    """x: (B, C, H, W); w: (k,) float32 Conv1d weight (squeezed from (1,1,k))."""
    B, C, H, W = x.shape
    HW = H * W

    # Lane-dense layout: spatial dims collapsed onto the trailing (lane) axis.
    # TODO(synk): when H*W % 128 != 0 each (b,c) row ends in a masked partial
    # store; restructure to a 128-lane-dense view with a per-lane gate if that
    # case becomes hot.
    xf = x.reshape(B, C, HW)

    cap = _vmem_capacity_bytes()
    if vmem_budget_bytes is None:
        # At most half of physical VMEM; small blocks saturate HBM anyway.
        vmem_budget_bytes = min(cap // 2, 24 * 1024 * 1024)

    bytes_per_batch = C * HW * x.dtype.itemsize
    out_buffers = 2
    in_buffers = 3                      # deeper input buffering hides DMA start latency
    bt = _pick_batch_tile(B, bytes_per_batch, vmem_budget_bytes,
                          in_buffers + out_buffers)
    steps = B // bt
    block_bytes = bt * bytes_per_batch
    if steps < 3 or (in_buffers + out_buffers) * block_bytes > vmem_budget_bytes:
        in_buffers = 2                  # default double buffering
    buffering = in_buffers + out_buffers

    # vmem_limit tracks the actual block footprint (+ headroom for the gate
    # scratch and compiler-internal buffers), capped below physical VMEM.
    vmem_limit = buffering * block_bytes + (4 << 20)
    vmem_limit = max(16 << 20, min(vmem_limit, cap - (8 << 20)))

    x_spec_kwargs = {}
    if in_buffers != 2:
        x_spec_kwargs["pipeline_mode"] = pl.Buffered(in_buffers)

    cost = pl.CostEstimate(
        flops=2 * B * C * HW,           # spatial-sum adds + broadcast multiply
        transcendentals=B * C,          # sigmoid
        bytes_accessed=2 * B * C * HW * x.dtype.itemsize,
    )

    out = pl.pallas_call(
        _afgc_kernel,
        out_shape=jax.ShapeDtypeStruct((B, C, HW), x.dtype),
        grid_spec=pltpu.PrefetchScalarGridSpec(
            num_scalar_prefetch=0,
            grid=(steps,),
            in_specs=[
                pl.BlockSpec(memory_space=pltpu.MemorySpace.SMEM),    # conv weight
                pl.BlockSpec((bt, C, HW), lambda b: (b, 0, 0),        # x tile (lane-dense)
                             **x_spec_kwargs),
            ],
            out_specs=pl.BlockSpec((bt, C, HW), lambda b: (b, 0, 0)),
        ),
        compiler_params=pltpu.CompilerParams(
            dimension_semantics=("parallel",),
            vmem_limit_bytes=int(vmem_limit),
        ),
        cost_estimate=cost,
        input_output_aliases=({1: 0} if donate_x else {}),
    )(w, xf)
    return out.reshape(B, C, H, W)


def _reference(x, w):
    """Pure-JAX reference matching the PyTorch forward."""
    B, C, H, W = x.shape
    k = w.shape[0]
    pad = (k - 1) // 2
    y = jnp.mean(x, axis=(2, 3))                           # (B, C)
    yp = jnp.pad(y, ((0, 0), (pad, pad)))                  # zero-padded along channels
    conv = sum(w[j] * yp[:, j:j + C] for j in range(k))    # (B, C)
    s = jax.nn.sigmoid(conv)
    return x * s[:, :, None, None]


if __name__ == "__main__":
    # Module hyperparameters (mirrors AFGCAttention.__init__)
    channel, b_hp, gamma = 16, 1, 2
    t = int(abs((math.log(channel, 2) + b_hp) / gamma))
    k = t if t % 2 else t + 1                              # channel=16 -> k=3

    B, C, H, W = 2, channel, 16, 16                        # H*W = 256 (lane-dense)

    key = jax.random.PRNGKey(0)
    kx, kw = jax.random.split(key)
    x = jax.random.normal(kx, (B, C, H, W), dtype=jnp.float32)
    # Deterministic conv1d weight init (kaiming-uniform-like bound 1/sqrt(k)).
    bound = 1.0 / math.sqrt(k)
    w = jax.random.uniform(kw, (k,), dtype=jnp.float32, minval=-bound, maxval=bound)

    out = jax.block_until_ready(afgc_attention(x, w))

    ref = _reference(x, w)
    assert out.shape == x.shape and out.dtype == x.dtype
    assert jnp.allclose(out, ref, atol=1e-5, rtol=1e-5), "mismatch vs reference"

    print("KERNEL_OK")
</pallas_src>

<mosaic_0001>
module attributes {stable_mosaic.version = 11 : i64} {
  func.func @_afgc_kernel(%arg0: i32, %arg1: memref<3xf32, #tpu.memory_space<smem>>, %arg2: memref<1x16x256xf32, #tpu.memory_space<vmem>>, %arg3: memref<1x16x256xf32, #tpu.memory_space<vmem>>) attributes {dimension_semantics = [#tpu.dimension_semantics<parallel>], iteration_bounds = array<i64: 2>, scalar_prefetch = 0 : i64, scratch_operands = 0 : i64, tpu.core_type = #tpu.core_type<tc>, window_params = [{transform_indices = @transform_0, window_bounds = array<i64: 3>}, {transform_indices = @transform_1, window_bounds = array<i64: 1, 16, 256>}, {transform_indices = @transform_2, window_bounds = array<i64: 1, 16, 256>}]} {
    %c0 = arith.constant 0 : index
    %c0_0 = arith.constant 0 : index
    %c0_1 = arith.constant 0 : index
    %0 = vector.load %arg2[%c0, %c0_0, %c0_1] : memref<1x16x256xf32, #tpu.memory_space<vmem>>, vector<1x16x256xf32>
    %cst = arith.constant dense<0.000000e+00> : vector<1x16xf32>
    %1 = vector.multi_reduction <add>, %0, %cst [2] : vector<1x16x256xf32> to vector<1x16xf32>
    %2 = vector.shape_cast %1 : vector<1x16xf32> to vector<1x16x1xf32>
    %cst_2 = arith.constant 3.906250e-03 : f32
    %3 = vector.broadcast %cst_2 : f32 to vector<1x16x1xf32>
    %4 = arith.mulf %2, %3 : vector<1x16x1xf32>
    %5 = vector.shape_cast %4 : vector<1x16x1xf32> to vector<16x1xf32>
    %6 = tpu.iota {dimensions = array<i32: 0>} : vector<16x1xi32>
    %c16_i32 = arith.constant 16 : i32
    %c0_i32 = arith.constant 0 : i32
    %7 = arith.cmpi eq, %c16_i32, %c0_i32 : i32
    %c1_i32 = arith.constant 1 : i32
    %8 = arith.select %7, %c1_i32, %c16_i32 : i32
    %9 = vector.broadcast %8 : i32 to vector<16x1xi32>
    %10 = arith.remsi %6, %9 : vector<16x1xi32>
    %c0_i32_3 = arith.constant 0 : i32
    %11 = vector.broadcast %c0_i32_3 : i32 to vector<16x1xi32>
    %12 = arith.cmpi ne, %10, %11 : vector<16x1xi32>
    %c0_i32_4 = arith.constant 0 : i32
    %13 = vector.broadcast %c0_i32_4 : i32 to vector<16x1xi32>
    %14 = arith.cmpi slt, %10, %13 : vector<16x1xi32>
    %c0_i32_5 = arith.constant 0 : i32
    %15 = arith.cmpi slt, %8, %c0_i32_5 : i32
    %16 = vector.broadcast %15 : i1 to vector<16x1xi1>
    %17 = vector.broadcast %16 : vector<16x1xi1> to vector<16x1xi1>
    %18 = arith.xori %14, %17 : vector<16x1xi1>
    %19 = arith.andi %18, %12 : vector<16x1xi1>
    %20 = vector.broadcast %8 : i32 to vector<16x1xi32>
    %21 = arith.addi %10, %20 : vector<16x1xi32>
    %22 = arith.select %19, %21, %10 : vector<16x1xi1>, vector<16x1xi32>
    %cst_6 = arith.constant 0.000000e+00 : f32
    %23 = vector.broadcast %cst_6 : f32 to vector<16x1xf32>
    %c1_i32_7 = arith.constant 1 : i32
    %24 = tpu.dynamic_rotate %5 by %c1_i32_7 dim 0 : vector<16x1xf32>, i32 -> vector<16x1xf32>
    %c-1_i32 = arith.constant -1 : i32
    %25 = vector.broadcast %c-1_i32 : i32 to vector<16x1xi32>
    %26 = arith.addi %22, %25 : vector<16x1xi32>
    %c0_i32_8 = arith.constant 0 : i32
    %27 = vector.broadcast %c0_i32_8 : i32 to vector<16x1xi32>
    %28 = arith.cmpi sge, %26, %27 : vector<16x1xi32>
    %c16_i32_9 = arith.constant 16 : i32
    %29 = vector.broadcast %c16_i32_9 : i32 to vector<16x1xi32>
    %30 = arith.cmpi slt, %26, %29 : vector<16x1xi32>
    %31 = arith.andi %28, %30 : vector<16x1xi1>
    %c0_10 = arith.constant 0 : index
    %32 = memref.load %arg1[%c0_10] : memref<3xf32, #tpu.memory_space<smem>>
    %cst_11 = arith.constant 0.000000e+00 : f32
    %33 = vector.broadcast %cst_11 : f32 to vector<16x1xf32>
    %34 = arith.select %31, %24, %33 : vector<16x1xi1>, vector<16x1xf32>
    %35 = vector.broadcast %32 : f32 to vector<16x1xf32>
    %36 = arith.mulf %35, %34 : vector<16x1xf32>
    %37 = arith.addf %23, %36 : vector<16x1xf32>
    %c0_i32_12 = arith.constant 0 : i32
    %38 = tpu.dynamic_rotate %5 by %c0_i32_12 dim 0 : vector<16x1xf32>, i32 -> vector<16x1xf32>
    %c0_i32_13 = arith.constant 0 : i32
    %39 = vector.broadcast %c0_i32_13 : i32 to vector<16x1xi32>
    %40 = arith.addi %22, %39 : vector<16x1xi32>
    %c0_i32_14 = arith.constant 0 : i32
    %41 = vector.broadcast %c0_i32_14 : i32 to vector<16x1xi32>
    %42 = arith.cmpi sge, %40, %41 : vector<16x1xi32>
    %c16_i32_15 = arith.constant 16 : i32
    %43 = vector.broadcast %c16_i32_15 : i32 to vector<16x1xi32>
    %44 = arith.cmpi slt, %40, %43 : vector<16x1xi32>
    %45 = arith.andi %42, %44 : vector<16x1xi1>
    %c1 = arith.constant 1 : index
    %46 = memref.load %arg1[%c1] : memref<3xf32, #tpu.memory_space<smem>>
    %cst_16 = arith.constant 0.000000e+00 : f32
    %47 = vector.broadcast %cst_16 : f32 to vector<16x1xf32>
    %48 = arith.select %45, %38, %47 : vector<16x1xi1>, vector<16x1xf32>
    %49 = vector.broadcast %46 : f32 to vector<16x1xf32>
    %50 = arith.mulf %49, %48 : vector<16x1xf32>
    %51 = arith.addf %37, %50 : vector<16x1xf32>
    %c15_i32 = arith.constant 15 : i32
    %52 = tpu.dynamic_rotate %5 by %c15_i32 dim 0 : vector<16x1xf32>, i32 -> vector<16x1xf32>
    %c1_i32_17 = arith.constant 1 : i32
    %53 = vector.broadcast %c1_i32_17 : i32 to vector<16x1xi32>
    %54 = arith.addi %22, %53 : vector<16x1xi32>
    %c0_i32_18 = arith.constant 0 : i32
    %55 = vector.broadcast %c0_i32_18 : i32 to vector<16x1xi32>
    %56 = arith.cmpi sge, %54, %55 : vector<16x1xi32>
    %c16_i32_19 = arith.constant 16 : i32
    %57 = vector.broadcast %c16_i32_19 : i32 to vector<16x1xi32>
    %58 = arith.cmpi slt, %54, %57 : vector<16x1xi32>
    %59 = arith.andi %56, %58 : vector<16x1xi1>
    %c2 = arith.constant 2 : index
    %60 = memref.load %arg1[%c2] : memref<3xf32, #tpu.memory_space<smem>>
    %cst_20 = arith.constant 0.000000e+00 : f32
    %61 = vector.broadcast %cst_20 : f32 to vector<16x1xf32>
    %62 = arith.select %59, %52, %61 : vector<16x1xi1>, vector<16x1xf32>
    %63 = vector.broadcast %60 : f32 to vector<16x1xf32>
    %64 = arith.mulf %63, %62 : vector<16x1xf32>
    %65 = arith.addf %51, %64 : vector<16x1xf32>
    %66 = arith.negf %65 : vector<16x1xf32>
    %67 = math.exp %66 : vector<16x1xf32>
    %cst_21 = arith.constant 1.000000e+00 : f32
    %68 = vector.broadcast %cst_21 : f32 to vector<16x1xf32>
    %69 = arith.addf %68, %67 : vector<16x1xf32>
    %70 = arith.divf %68, %69 : vector<16x1xf32>
    %71 = vector.shape_cast %70 : vector<16x1xf32> to vector<1x16x1xf32>
    %c0_22 = arith.constant 0 : index
    %c0_23 = arith.constant 0 : index
    %c0_24 = arith.constant 0 : index
    %72 = vector.load %arg2[%c0_22, %c0_23, %c0_24] : memref<1x16x256xf32, #tpu.memory_space<vmem>>, vector<1x16x256xf32>
    %73 = vector.broadcast %71 : vector<1x16x1xf32> to vector<1x16x256xf32>
    %74 = arith.mulf %72, %73 : vector<1x16x256xf32>
    %c0_25 = arith.constant 0 : index
    %c0_26 = arith.constant 0 : index
    %c0_27 = arith.constant 0 : index
    %75 = vector.load %arg3[%c0_25, %c0_26, %c0_27] : memref<1x16x256xf32, #tpu.memory_space<vmem>>, vector<1x16x256xf32>
    tpu.vector_store %arg3[%c0_25, %c0_26, %c0_27], %74 {strides = array<i32>} : memref<1x16x256xf32, #tpu.memory_space<vmem>>, vector<1x16x256xf32>,
    return
  }
  func.func @transform_0(%arg0: i32) -> i32 {
    %c0_i32 = arith.constant 0 : i32
    %c0_i32_0 = arith.constant 0 : i32
    return %c0_i32 : i32
  }
  func.func @transform_1(%arg0: i32) -> (i32, i32, i32) {
    %c0_i32 = arith.constant 0 : i32
    %c0_i32_0 = arith.constant 0 : i32
    %c0_i32_1 = arith.constant 0 : i32
    return %arg0, %c0_i32, %c0_i32_0 : i32, i32, i32
  }
  func.func @transform_2(%arg0: i32) -> (i32, i32, i32) {
    %c0_i32 = arith.constant 0 : i32
    %c0_i32_0 = arith.constant 0 : i32
    %c0_i32_1 = arith.constant 0 : i32
    return %arg0, %c0_i32, %c0_i32_0 : i32, i32, i32
  }
}

</mosaic_0001>

<bundles_post_ra>
// kernel: tpu_custom_call.1
= control target key start
LH: loop header
LB: loop body
LE: loop exit
PB: predicated region body
PF: predicated region fallthrough
CT: control target
= control target key end

     0   :  { %7 = vsyncpa [#allocation5], 0  ;;  %s840_s0 = inlined_call_operand.hbm [shape: f32[3], index: 0, kind: input, shape index: {}]   ;;  %s841_s1 = inlined_call_operand.hbm [shape: f32[2,16,256], index: 1, kind: input, shape index: {}]   ;;  %s842_s2 = inlined_call_operand.hbm [shape: f32[2,16,256], index: 2, kind: output, shape index: {}]  }
   0x1   :  { %8 = vsyncpa [#allocation3], 0 }
   0x2   :  { %10 = vsyncpa [#allocation3 + $0x1], 0 }
   0x3   :  { %11 = vsyncpa [#allocation4], 0 }
   0x4   :  { %13 = vsyncpa [#allocation4 + $0x1], 0  ;;  %s630_s9 = smov 0   ;;  %s632_s10 = smov 0  }
   0x5   :  { %s634_s11 = smov 0   ;;  %s636_s12 = smov 0  }
   0x6 LB: > { %s651_s13 = sadd.s32 4294967295, %s605_s12   ;;  %s398_s14 = sadd.s32 4294967294, %s605_s12   ;;  %s605_s12 = sphi %s636_s12, %s862_s12   ;;  %s601_s11 = sphi %s634_s11, %s861_s11   ;;  %s597_s10 = sphi %s632_s10, %s860_s10   ;;  %s593_s9 = sphi %s630_s9, %s859_s9  }
   0x7   : > { %s655_s15 = sadd.s32 1, %s605_s12   ;;  %s47_s16 = sadd.s32 1, %s601_s11 }
   0x8   : > { %s44_s17 = ssub.s32 %s605_s12, %s655_s15  ;;  %p54_p0 = scmp.ne.s32.totalorder %s601_s11, %s597_s10 }
   0x9   : > { %p45_p1 = scmp.eq.s32.totalorder %s44_s17, 0  ;;  %p55_p2 = scmp.eq.s32.totalorder %s605_s12, 0 }
   0xa   : > { %p60_p3 = scmp.ne.s32.totalorder %s597_s10, %s593_s9  ;;  %p843_p4 = scmp.eq.s32.totalorder %s651_s13, 0 }
   0xb   : > { %s667_s18 = scalar_select %p45_p1, %s601_s11, %s47_s16  }
   0xc   : > { %p669_p5 = por %p55_p2, %p54_p0  ;;  %p675_p6 = por %p843_p4, %p60_p3 }
   0xd   : > { %p84_p7 = scmp.eq.s32.totalorder %s651_s13, 1  ;;  %p90_p8 = scmp.eq.s32.totalorder %s398_s14, 1 }
   0xe   : > { %s847_s20 = scalar_select %p675_p6, 1, 0 }
   0xf   : > { %p399_p9 = scmp.ge.s32.totalorder %s605_s12, 1  ;;  %p97_p10 = scmp.lt.s32.totalorder %s605_s12, 3 }
  0x10   : > { %p682_p11 = por %p84_p7, %p54_p0  ;;  %p686_p12 = por %p90_p8, %p60_p3 }
  0x11   : > { %p690_p13 = pnand %p399_p9, %p97_p10  ;;  %p441_p4 = scmp.lt.s32.totalorder %s605_s12, 2 }
  0x12   : > { %s848_s21 = scalar_select %p682_p11, 1, 0 }
  0x13   : > { %s849_s22 = scalar_select %p686_p12, 1, 0 }
  0x14   : > { %p428_p2 = pneg %p690_p13  ;;  %s119_s24 = sand.u32 1, %s601_s11  }
  0x15   : > { %s418_s25 = sshll.u32 %s605_s12, 9  ;;  %p851_p6 = scmp.eq.s32.totalorder %s651_s13, 0 }
  0x16   : > { %p704_p7 = pnand %p441_p4, %p669_p5  ;;  %s402_s27 = sshll.u32 %s119_s24, 5 }
  0x17   : > { %p429_p0 = pnand %p428_p2, %p851_p6  ;;  %s492_s30 = scalar_lea.hbm %s840_s0, 16 }
  0x18   : > { %p493_p3 = scmp.ne.s32.totalorder %s840_s0, %s492_s30  ;;  %p499_p6 = scmp.lt.u32.totalorder %s492_s30, %s840_s0 }
  0x19   : > { %p494_p8 = pneg %p429_p0 }
  0x1b   : > { %p495_p9 = pnand %p494_p8, %p493_p3 }
  0x1d   : > { %p496_p10 = pneg %p495_p9 }
  0x1f   : > { %p501_p4 = pnand %p499_p6, %p496_p10 }
  0x21   : > { %504 = shalt.err (!%p501_p4)
}
  0x22   : > { %s607_s7 = smov [#allocation2]   ;;  %s723_s19 = scalar_lea.hbm %s841_s1, %s418_s25 }
  0x23   : > { %431 = dma.hbm_to_smem (!%p429_p0), %s840_s0, 16, %s607_s7, [#allocation5]  }
  0x24   : > { %s123_s28 = scalar_lea.vmem [#allocation6], %s402_s27  ;;  %s727_s30 = scalar_lea.sflag [#allocation3], %s119_s24 }
  0x25   : > { %s130_s29 = sshll.u32 %s123_s28, 4  ;;  %s505_s3 = scalar_lea.hbm %s723_s19, 512  ;;  %s725_s29 = int_to_ptr.vmem [resolvable:$true] %s130_s29 }
  0x26   : > { %p506_p5 = scmp.ne.s32.totalorder %s723_s19, %s505_s3  ;;  %p507_p2 = pneg %p704_p7 }
  0x27   : > { %s510_s5 = scalar_lea.hbm %s841_s1, 1024  ;;  %p511_p8 = scmp.lt.u32.totalorder %s723_s19, %s841_s1 }
  0x28   : > { %p508_p0 = pnand %p507_p2, %p506_p5  ;;  %p512_p9 = scmp.lt.u32.totalorder %s510_s5, %s505_s3 }
  0x29   : > { %p514_p6 = scmp.lt.u32.totalorder %s505_s3, %s723_s19 }
  0x2a   : > { %p509_p3 = pneg %p508_p0  ;;  %p513_p10 = por %p512_p9, %p511_p8 }
  0x2c   : > { %p515_p4 = por %p514_p6, %p513_p10 }
  0x2e   : > { %p516_p1 = pnand %p515_p4, %p509_p3 }
  0x30   : > { %519 = shalt.err (!%p516_p1)
}
  0x31   : > { %s520_s24 = scalar_lea.vmem %s725_s29, 512  ;;  %s608_s27 = smov [#allocation6]  }
  0x32   : > { %p521_p5 = scmp.ne.s32.totalorder %s725_s29, %s520_s24  ;;  %s525_s8 = sshll.u32 %s608_s27, 4  ;;  %s526_s8 = int_to_ptr.vmem [resolvable:$false] %s525_s8 }
  0x33   : > { %s527_s14 = scalar_lea.vmem %s526_s8, 1024  ;;  %p528_p11 = scmp.lt.s32.totalorder %s725_s29, %s526_s8 }
  0x34   : > { %p523_p0 = pnand %p521_p5, %p507_p2  ;;  %p529_p8 = scmp.lt.s32.totalorder %s527_s14, %s520_s24 }
  0x36   : > { %p524_p12 = pneg %p523_p0  ;;  %p530_p9 = por %p529_p8, %p528_p11 }
  0x38   : > { %p531_p10 = pnand %p530_p9, %p524_p12 }
  0x3a   : > { %534 = shalt.err (!%p531_p10)
}
  0x3b   : > { %s609_s16 = smov 256   ;;  %s610_s17 = smov 16  }
  0x3c   : > { %435 = dma.hbm_to_vmem [thread:$0]  (!%p704_p7), %s723_s19, 512, %s725_s29, %s727_s30, %s609_s16, %s609_s16, %s610_s17  }
  0x3d   : > { %142 = sbr.rel (%p690_p13) target bundleno = 411 (0x19b), region = 28  ;;  %p853_p1 = scmp.eq.s32.totalorder (!%p690_p13), %s651_s13, 0 }
  0x44   : > { %580 = dma.done.wait (%p853_p1), [#allocation5], 16   ;;  %p854_p2 = pmov %p853_p1 }
  0x45   : > { %s762_s28 = sand.u32 1, %s597_s10   ;;  %p855_p11 = scmp.ne.s32.totalorder %s847_s20, 0 }
  0x46   : > { %582 = vsyncadd (%p854_p2), [#allocation5], 4294967280  ;;  %s407_s3 = sshll.u32 %s762_s28, 5  ;;  %s149_s25 = scalar_lea.sflag [#allocation3], %s762_s28 }
  0x47   : > { %s152_s26 = scalar_lea.vmem [#allocation6], %s407_s3 }
  0x48   : > { %584 = dma.done.wait (%p855_p11), %s149_s25, 512  }
  0x49   : > { %586 = vsyncadd (%p855_p11), %s149_s25, 4294966784 }
  0x4a   : > { %157 = sfence }
  0x4b   : > { %v772_v0 = vld [vmem:[%s152_s26] sm:$0xff]  ;;  %v774_v1 = vld [vmem:[%s152_s26 + $0x8] sm:$0xff]  ;;  %v776_v2 = vld [vmem:[%s152_s26 + $0x10] sm:$0xff]  ;;  %v611_v6 = vmov 0   ;;  %v186_v7 = vlaneseq  ;;  %s226_s20 = sld [smem:[#allocation2]]  ;;  %s409_s23 = sld [smem:[#allocation2 + $0x1]] }
  0x4c   : > { %v178_v3 = vadd.f32 %v774_v1, %v772_v0  ;;  %v780_v4 = vld [vmem:[%s152_s26 + $0x18] sm:$0xff]  ;;  %482 = vset.pattern.permute.xlu1 %v611_v6  ;;  %483 = vset.pattern.permute.xlu0 %v611_v6  ;;  %s410_s19 = sld [smem:[#allocation2 + $0x2]]  ;;  %s173_s29 = scalar_lea.vmem [#allocation7], %s407_s3 }
  0x4d   : > { %v181_v5 = vadd.f32 %v780_v4, %v776_v2  ;;  %v187_v8 = vshrl.u32 %v186_v7, 7  ;;  %s313_s30 = sshll.u32 %s173_s29, 4  ;;  %s419_s4 = sshll.u32 %s651_s13, 9  ;;  %s789_s30 = int_to_ptr.vmem [resolvable:$true] %s313_s30 }
  0x4e   : > { %179 = vadd.xlane.f32.xlu0 %v178_v3  ;;  %s794_s7 = scalar_lea.hbm %s842_s2, %s419_s4  ;;  %s300_s13 = scalar_lea.sflag [#allocation4], %s762_s28 }
  0x4f   : > { %v188_v9 = vadd.s32 8, %v187_v8  ;;  %v193_v10 = vand.u32 15, %v187_v8  ;;  %vm215_vm0 = vcmp.lt.s32.totalorder %v187_v8, 1  ;;  %vm250_vm2 = vcmp.lt.s32.totalorder %v187_v8, 7  ;;  %s535_s24 = scalar_lea.vmem %s789_s30, 512  ;;  %p856_p13 = scmp.ne.s32.totalorder %s848_s21, 0 }
  0x50   : > { %p536_p12 = scmp.ne.s32.totalorder %s789_s30, %s535_s24  ;;  %s612_s27 = smov [#allocation7]  }
  0x51   : > { %v200_v11 = vand.u32 15, %v188_v9  ;;  %v218_v13 = vadd.s32 4294967295, %v193_v10  ;;  %v229_v18 = vstv %s226_s20  ;;  %v243_v23 = vstv %s409_s23  ;;  %s539_s8 = sshll.u32 %s612_s27, 4  ;;  %s540_s8 = int_to_ptr.vmem [resolvable:$false] %s539_s8 }
  0x52   : > { %182 = vadd.xlane.f32.xlu0 %v181_v5  ;;  %v264_v24 = vstv %s410_s19  ;;  %p537_p7 = pnand %p536_p12, %p856_p13  ;;  %s541_s14 = scalar_lea.vmem %s540_s8, 1024 }
  0x53   : > { %v254_v14 = vadd.s32 1, %v200_v11  ;;  %vm220_vm1 = vcmp.ge.s32.totalorder %v218_v13, 0  ;;  %p542_p6 = scmp.lt.s32.totalorder %s789_s30, %s540_s8  ;;  %p543_p4 = scmp.lt.s32.totalorder %s541_s14, %s535_s24 }
  0x54   : > { %p538_p3 = pneg %p537_p7 }
  0x55   : > { %vm258_vm3 = vcmp.lt.s32.totalorder %v254_v14, 16  ;;  %p544_p5 = por %p543_p4, %p542_p6 }
  0x57   : > { %p545_p0 = pnand %p544_p5, %p538_p3 }
  0xdb   : > { %v180_v12 = vpop.xlane.xlu0 %179 }
  0xdc   : > { %v184_v15 = vmul.f32 0.00390625, %v180_v12 }
  0xde   : > { %v213_v19 = vrot.slane %v184_v15, 7  ;;  %v248_v20 = vrot.slane %v184_v15, 1  ;;  %v244_v33 = vmul.f32 %v243_v23, %v184_v15 }
  0xdf   : > { %v183_v16 = vpop.xlane.xlu0 %182 }
  0xe0   : > { %v185_v17 = vmul.f32 0.00390625, %v183_v16 }
  0xe2   : > { %v214_v21 = vrot.slane %v185_v17, 7  ;;  %v249_v22 = vrot.slane %v185_v17, 1  ;;  %v245_v27 = vmul.f32 %v243_v23, %v185_v17 }
  0xe4   : > { %v216_v25 = vsel %vm215_vm0, %v213_v19, %v214_v21  ;;  %v217_v26 = vsel %vm215_vm0, %v214_v21, %v213_v19  ;;  %v252_v28 = vsel %vm250_vm2, %v249_v22, %v248_v20  ;;  %v251_v31 = vsel %vm250_vm2, %v248_v20, %v249_v22 }
  0xe5   : > { %v227_v29 = vsel %vm220_vm1, %v217_v26, 0.0  ;;  %v231_v30 = vmul.f32 %v229_v18, %v216_v25  ;;  %v263_v32 = vsel %vm258_vm3, %v252_v28, 0.0  ;;  %v265_v38 = vmul.f32 %v264_v24, %v251_v31 }
  0xe6   : > { %v230_v34 = vmul.f32 %v229_v18, %v227_v29  ;;  %v266_v35 = vmul.f32 %v264_v24, %v263_v32 }
  0xe7   : > { %v247_v36 = vadd.f32 %v245_v27, %v231_v30 }
  0xe8   : > { %v246_v37 = vadd.f32 %v244_v33, %v230_v34 }
  0xe9   : > { %v268_v39 = vadd.f32 %v266_v35, %v247_v36 }
  0xea   : > { %v267_v40 = vadd.f32 %v265_v38, %v246_v37 }
  0xeb   : > { %v412_v41 = vmul.f32 -1.442695, %v268_v39 }
  0xec   : > { %v411_v42 = vmul.f32 -1.442695, %v267_v40 }
  0xed   : > { %484 = vpow2.f32 %v412_v41 }
  0xee   : > { %486 = vpow2.f32 %v411_v42 }
  0xf7   : > { %v485_v43 = vpop.eup %484 }
  0xf8   : > { %v487_v44 = vpop.eup %486  ;;  %v276_v46 = vadd.f32 1.0, %v485_v43 }
  0xf9   : > { %v275_v45 = vadd.f32 1.0, %v487_v44 }
  0xfb   : > { %488 = vrcp.f32 %v275_v45 }
  0xfc   : > { %490 = vrcp.f32 %v276_v46 }
 0x105   : > { %v489_v47 = vpop.eup %488 }
 0x106   : > { %283 = vperm.xlu1 %482, %v489_v47   ;;  %v491_v48 = vpop.eup %490 }
 0x10a   : > { %288 = vperm.xlu1 %482, %v491_v48  }
 0x185   : > { %v284_v49 = vpop.permute.xlu1 %283 }
 0x186   : > { %v291_v50 = vmul.f32 %v284_v49, %v772_v0  ;;  %v292_v51 = vmul.f32 %v284_v49, %v774_v1 }
 0x188   : > { %295 = vst [vmem:[%s173_s29] sm:$0xff] %v291_v50  ;;  %296 = vst [vmem:[%s173_s29 + $0x8] sm:$0xff] %v292_v51 }
 0x189   : > { %v289_v52 = vpop.permute.xlu1 %288 }
 0x18a   : > { %v293_v53 = vmul.f32 %v289_v52, %v776_v2  ;;  %v294_v54 = vmul.f32 %v289_v52, %v780_v4 }
 0x18c   : > { %297 = vst [vmem:[%s173_s29 + $0x10] sm:$0xff] %v293_v53  ;;  %298 = vst [vmem:[%s173_s29 + $0x18] sm:$0xff] %v294_v54 }
 0x18d   : > { %548 = shalt.err (!%p545_p0)
}
 0x18e   : > { %s549_s16 = scalar_lea.hbm %s794_s7, 512  ;;  %s553_s25 = scalar_lea.hbm %s842_s2, 1024 }
 0x18f   : > { %p550_p8 = scmp.ne.s32.totalorder %s794_s7, %s549_s16  ;;  %p554_p1 = scmp.lt.u32.totalorder %s794_s7, %s842_s2 }
 0x190   : > { %p555_p2 = scmp.lt.u32.totalorder %s553_s25, %s549_s16  ;;  %p557_p12 = scmp.lt.u32.totalorder %s549_s16, %s794_s7 }
 0x191   : > { %p551_p9 = pnand %p550_p8, %p856_p13 }
 0x192   : > { %p556_p11 = por %p555_p2, %p554_p1 }
 0x193   : > { %p552_p10 = pneg %p551_p9 }
 0x194   : > { %p558_p7 = por %p557_p12, %p556_p11 }
 0x196   : > { %p559_p3 = pnand %p558_p7, %p552_p10 }
 0x198   : > { %562 = shalt.err (!%p559_p3)
}
 0x199   : > { %s613_s23 = smov 256   ;;  %s614_s19 = smov 16  }
 0x19a   : > { %426 = dma.vmem_to_hbm [thread:$0]  (%p856_p13), %s789_s30, 512, %s794_s7, %s300_s13, %s613_s23, %s613_s23, %s614_s19  }
 0x19b PF: > { %s328_s29 = sand.u32 1, %s593_s9   ;;  %p857_p6 = scmp.ne.s32.totalorder %s849_s22, 0 }
 0x19c   : > { %p858_p4 = scmp.ge.s32.totalorder %s605_s12, 2  ;;  %s329_s4 = scalar_lea.sflag [#allocation4], %s328_s29 }
 0x19e   : > { %p437_p5 = pnand %p858_p4, %p857_p6 }
 0x1a0   : > { %588 = dma.done.wait (!%p437_p5), %s329_s4, 512  }
 0x1a1   : > { %590 = vsyncadd (!%p437_p5), %s329_s4, 4294966784  ;;  %p16_p0 = scmp.ge.s32.totalorder %s655_s15, 4   ;;  %s859_s9 = smov %s597_s10 }
 0x1a2   : > { %s860_s10 = smov %s601_s11  ;;  %s861_s11 = smov %s667_s18 }
 0x1a3   : > { %s862_s12 = smov %s655_s15  ;;  %18 = sbr.rel (!%p16_p0) target bundleno = 6 (0x6), region = 78 }
 0x1aa   :  { %334 = vsyncpa [#allocation3], 1 }
 0x1ab   :  { %336 = vsyncpa [#allocation3 + $0x1], 1 }
 0x1ac   :  { %337 = vsyncpa [#allocation4], 1 }
 0x1ad   :  { %339 = vsyncpa [#allocation4 + $0x1], 1 }
 0x1ae   :  { %340 = vsyncpa [#allocation5], 1 }
 0x1af   :  { %342 = vsyncpa [#allocation5 + $0x1], 1 }

</bundles_post_ra>
